<compile_context>
chip_gen: v5e
topology: v5e:2x2
jax: 0.10.0
libtpu: 0.0.40
codegen_flags: <defaults>
</compile_context>

<pallas_src>
import functools

import jax
import jax.numpy as jnp
from jax.experimental import pallas as pl
from jax.experimental.pallas import tpu as pltpu

BN_EPS = 1e-5


def _round_up(x: int, m: int) -> int:
    return ((x + m - 1) // m) * m


# ----------------------------------------------------------------------------
# Kernel
# ----------------------------------------------------------------------------
def residual_block_kernel(x_ref, w1_ref, b1_ref, w2_ref, b2_ref, out_ref):
    """One batch tile: relu(x + relu(x@W1e + b1e) @ W2e + b2e).

    x tile is f32; weights are bf16 (MXU-native); accumulation is f32 and the
    whole epilogue (bias, relu, residual) stays in f32.
    """
    x = x_ref[...]                                                   # (tm, Cp) f32

    # Layer 1 (Linear + folded BN) -> ReLU
    h = jnp.dot(x.astype(w1_ref.dtype), w1_ref[...],
                preferred_element_type=jnp.float32)                  # MXU, f32 acc
    h = jnp.maximum(h + b1_ref[...], 0.0)                            # VPU, f32

    # Layer 2 (Linear + folded BN)
    h = jnp.dot(h.astype(w2_ref.dtype), w2_ref[...],
                preferred_element_type=jnp.float32)
    h = h + b2_ref[...]

    # Residual + final ReLU.  Note: padded *batch rows* of the output are NOT
    # zero (they get relu(relu(b1e)@W2e + b2e)); they are sliced off by the
    # wrapper and must never be relied upon.
    out_ref[...] = jnp.maximum(x + h, 0.0).astype(out_ref.dtype)


# ----------------------------------------------------------------------------
# Parameter preparation (done once, outside the per-call path)
# ----------------------------------------------------------------------------
def fold_bn_into_linear(w, b, gamma, beta, mean, var, eps=BN_EPS):
    """Fold eval-mode BatchNorm1d into the preceding Linear.

    w: (C_in, C_out)   b: (C_out,)   BN params: (C_out,)
    Returns (w_eff (C_in, C_out), b_eff (1, C_out)) in f32.
    """
    scale = gamma / jnp.sqrt(var + eps)          # (C_out,)
    shift = beta - mean * scale                  # (C_out,)
    w_eff = w * scale[None, :]
    b_eff = (b * scale + shift)[None, :]
    return w_eff, b_eff


def prepare_params(w1, b1, g1, be1, m1, v1,
                   w2, b2, g2, be2, m2, v2,
                   *, eps=BN_EPS, weight_dtype=jnp.bfloat16):
    """Fold BN, zero-pad the feature dim to a multiple of 128 (lane-dense),
    and cast weights to bf16.  Biases stay f32 (added in the f32 epilogue)."""
    C = w1.shape[0]
    Cp = _round_up(C, 128)
    pad = Cp - C

    w1e, b1e = fold_bn_into_linear(w1, b1, g1, be1, m1, v1, eps)
    w2e, b2e = fold_bn_into_linear(w2, b2, g2, be2, m2, v2, eps)

    w1p = jnp.pad(w1e, ((0, pad), (0, pad))).astype(weight_dtype)
    w2p = jnp.pad(w2e, ((0, pad), (0, pad))).astype(weight_dtype)
    b1p = jnp.pad(b1e, ((0, 0), (0, pad))).astype(jnp.float32)
    b2p = jnp.pad(b2e, ((0, 0), (0, pad))).astype(jnp.float32)
    return w1p, b1p, w2p, b2p


# ----------------------------------------------------------------------------
# Wrapper
# ----------------------------------------------------------------------------
@functools.partial(jax.jit, static_argnames=("block_rows",))
def residual_block(x, w1p, b1p, w2p, b2p, *, block_rows=256):
    """Pads batch/features to hardware-native shapes and tiles the batch dim.

    x      : (B, C) f32
    w1p/w2p: (Cp, Cp) bf16 (pre-folded, pre-padded)
    b1p/b2p: (1, Cp)  f32  (pre-folded, pre-padded)
    """
    B, C = x.shape
    Cp = w1p.shape[0]
    dtype = x.dtype

    # Batch tile: small enough to bound pad waste / intermediate size, big
    # enough to amortize per-grid-step overhead (~0.35 us).
    tm = min(_round_up(max(B, 1), 8), block_rows)
    grid_m = pl.cdiv(B, tm)
    Bp = grid_m * tm

    x_p = jnp.pad(x, ((0, Bp - B), (0, Cp - C)))

    # Scoped-VMEM budget: single-buffered weights + double-buffered x/out
    # tiles + f32 intermediates, x2 headroom.  Floored at 32 MiB (never below
    # the per-chip defaults it is meant to raise), capped below any physical
    # VMEM we could plausibly use.
    w_bytes = 2 * Cp * Cp * jnp.dtype(w1p.dtype).itemsize
    io_bytes = 2 * 2 * tm * Cp * jnp.dtype(dtype).itemsize
    work_bytes = 3 * tm * Cp * 4
    vmem_limit = int(min(max(2 * (w_bytes + io_bytes + work_bytes) + (4 << 20),
                             32 << 20), 96 << 20))

    cost = pl.CostEstimate(
        flops=4 * Bp * Cp * Cp,                      # two (Bp,Cp)x(Cp,Cp) matmuls
        transcendentals=0,
        bytes_accessed=(x_p.size * x_p.dtype.itemsize            # x in
                        + Bp * Cp * jnp.dtype(dtype).itemsize    # out
                        + w_bytes                                # both weights
                        + 2 * Cp * 4),                           # biases
    )

    resident = dict(pipeline_mode=pl.Buffered(1))    # constant index_map blocks

    out_p = pl.pallas_call(
        residual_block_kernel,
        out_shape=jax.ShapeDtypeStruct((Bp, Cp), dtype),
        grid=(grid_m,),
        in_specs=[
            pl.BlockSpec((tm, Cp), lambda i: (i, 0)),              # x: streamed
            pl.BlockSpec((Cp, Cp), lambda i: (0, 0), **resident),  # W1e resident
            pl.BlockSpec((1, Cp), lambda i: (0, 0), **resident),   # b1e resident
            pl.BlockSpec((Cp, Cp), lambda i: (0, 0), **resident),  # W2e resident
            pl.BlockSpec((1, Cp), lambda i: (0, 0), **resident),   # b2e resident
        ],
        out_specs=pl.BlockSpec((tm, Cp), lambda i: (i, 0)),
        compiler_params=pltpu.CompilerParams(
            dimension_semantics=("parallel",),
            vmem_limit_bytes=vmem_limit,
        ),
        cost_estimate=cost,
    )(x_p, w1p, b1p, w2p, b2p)

    return out_p[:B, :C]


# ----------------------------------------------------------------------------
# Test / reference
# ----------------------------------------------------------------------------
def init_params(key, channels):
    """Deterministic params mimicking nn.Linear + BatchNorm1d with non-trivial
    running stats so the BN path is actually exercised."""
    keys = jax.random.split(key, 8)
    bound = 1.0 / jnp.sqrt(jnp.float32(channels))

    w1 = jax.random.uniform(keys[0], (channels, channels), jnp.float32, -bound, bound)
    b1 = jax.random.uniform(keys[1], (channels,), jnp.float32, -bound, bound)
    w2 = jax.random.uniform(keys[2], (channels, channels), jnp.float32, -bound, bound)
    b2 = jax.random.uniform(keys[3], (channels,), jnp.float32, -bound, bound)

    gamma1 = 1.0 + 0.1 * jax.random.normal(keys[4], (channels,), jnp.float32)
    beta1 = 0.1 * jax.random.normal(keys[5], (channels,), jnp.float32)
    mean1 = 0.1 * jax.random.normal(keys[6], (channels,), jnp.float32)
    var1 = jax.random.uniform(keys[7], (channels,), jnp.float32, 0.5, 1.5)

    k2 = jax.random.split(keys[7], 4)
    gamma2 = 1.0 + 0.1 * jax.random.normal(k2[0], (channels,), jnp.float32)
    beta2 = 0.1 * jax.random.normal(k2[1], (channels,), jnp.float32)
    mean2 = 0.1 * jax.random.normal(k2[2], (channels,), jnp.float32)
    var2 = jax.random.uniform(k2[3], (channels,), jnp.float32, 0.5, 1.5)

    return (w1, b1, gamma1, beta1, mean1, var1,
            w2, b2, gamma2, beta2, mean2, var2)


def reference(x, params):
    """Pure-JAX f32 reference of the PyTorch eval-mode forward (unfolded BN)."""
    (w1, b1, g1, be1, m1, v1, w2, b2, g2, be2, m2, v2) = params
    h = x @ w1 + b1
    h = (h - m1) / jnp.sqrt(v1 + BN_EPS) * g1 + be1
    h = jnp.maximum(h, 0.0)
    # dropout: identity in eval mode
    h = h @ w2 + b2
    h = (h - m2) / jnp.sqrt(v2 + BN_EPS) * g2 + be2
    return jnp.maximum(x + h, 0.0)


if __name__ == "__main__":
    key = jax.random.PRNGKey(0)
    kx, kp = jax.random.split(key)

    # Small shapes for correctness; at this size the pallas_call is dominated
    # by fixed overhead — benchmark with realistic B (>=1024) and C (>=512).
    batch, channels = 2, 32
    x = jax.random.normal(kx, (batch, channels), jnp.float32)
    params = init_params(kp, channels)

    # One-time parameter prep: BN fold + feature pad + bf16 cast.
    w1p, b1p, w2p, b2p = prepare_params(*params)

    out = residual_block(x, w1p, b1p, w2p, b2p)
    jax.block_until_ready(out)

    out_ref = reference(x, params)

    assert out.shape == (batch, channels)
    # bf16 weights / bf16 inter-layer activation => looser tolerance vs the
    # f32 reference (standard mixed-precision tradeoff).
    max_err = float(jnp.max(jnp.abs(out - out_ref)))
    assert jnp.allclose(out, out_ref, atol=3e-2, rtol=3e-2), max_err
    assert bool(jnp.all(out >= 0.0))  # final ReLU

    print("KERNEL_OK")
</pallas_src>

<mosaic_0001>
module attributes {stable_mosaic.version = 11 : i64} {
  func.func @residual_block_kernel(%arg0: i32, %arg1: memref<8x128xf32, #tpu.memory_space<vmem>>, %arg2: memref<128x128xbf16, #tpu.memory_space<vmem>>, %arg3: memref<1x128xf32, #tpu.memory_space<vmem>>, %arg4: memref<128x128xbf16, #tpu.memory_space<vmem>>, %arg5: memref<1x128xf32, #tpu.memory_space<vmem>>, %arg6: memref<8x128xf32, #tpu.memory_space<vmem>>) attributes {dimension_semantics = [#tpu.dimension_semantics<parallel>], iteration_bounds = array<i64: 1>, scalar_prefetch = 0 : i64, scratch_operands = 0 : i64, tpu.core_type = #tpu.core_type<tc>, window_params = [{transform_indices = @transform_0, window_bounds = array<i64: 8, 128>}, {pipeline_mode = #tpu.pipeline_mode<synchronous>, transform_indices = @transform_1, window_bounds = array<i64: 128, 128>}, {pipeline_mode = #tpu.pipeline_mode<synchronous>, transform_indices = @transform_2, window_bounds = array<i64: 1, 128>}, {pipeline_mode = #tpu.pipeline_mode<synchronous>, transform_indices = @transform_3, window_bounds = array<i64: 128, 128>}, {pipeline_mode = #tpu.pipeline_mode<synchronous>, transform_indices = @transform_4, window_bounds = array<i64: 1, 128>}, {transform_indices = @transform_5, window_bounds = array<i64: 8, 128>}]} {
    %c0 = arith.constant 0 : index
    %c0_0 = arith.constant 0 : index
    %0 = vector.load %arg1[%c0, %c0_0] : memref<8x128xf32, #tpu.memory_space<vmem>>, vector<8x128xf32>
    %1 = arith.truncf %0 : vector<8x128xf32> to vector<8x128xbf16>
    %c0_1 = arith.constant 0 : index
    %c0_2 = arith.constant 0 : index
    %2 = vector.load %arg2[%c0_1, %c0_2] : memref<128x128xbf16, #tpu.memory_space<vmem>>, vector<128x128xbf16>
    %cst = arith.constant dense<0.000000e+00> : vector<8x128xf32>
    %3 = tpu.matmul %1, %2, %cst {dimension_numbers = #tpu.dot_dimension_numbers<[1], [0], [0], [1], [0, 0, 1, 1], [], []>} : vector<8x128xbf16>, vector<128x128xbf16>, vector<8x128xf32> -> vector<8x128xf32>
    %c0_3 = arith.constant 0 : index
    %c0_4 = arith.constant 0 : index
    %4 = vector.load %arg3[%c0_3, %c0_4] : memref<1x128xf32, #tpu.memory_space<vmem>>, vector<1x128xf32>
    %5 = vector.broadcast %4 : vector<1x128xf32> to vector<8x128xf32>
    %6 = arith.addf %3, %5 : vector<8x128xf32>
    %cst_5 = arith.constant 0.000000e+00 : f32
    %7 = vector.broadcast %cst_5 : f32 to vector<8x128xf32>
    %8 = arith.maximumf %6, %7 : vector<8x128xf32>
    %9 = arith.truncf %8 : vector<8x128xf32> to vector<8x128xbf16>
    %c0_6 = arith.constant 0 : index
    %c0_7 = arith.constant 0 : index
    %10 = vector.load %arg4[%c0_6, %c0_7] : memref<128x128xbf16, #tpu.memory_space<vmem>>, vector<128x128xbf16>
    %cst_8 = arith.constant dense<0.000000e+00> : vector<8x128xf32>
    %11 = tpu.matmul %9, %10, %cst_8 {dimension_numbers = #tpu.dot_dimension_numbers<[1], [0], [0], [1], [0, 0, 1, 1], [], []>} : vector<8x128xbf16>, vector<128x128xbf16>, vector<8x128xf32> -> vector<8x128xf32>
    %c0_9 = arith.constant 0 : index
    %c0_10 = arith.constant 0 : index
    %12 = vector.load %arg5[%c0_9, %c0_10] : memref<1x128xf32, #tpu.memory_space<vmem>>, vector<1x128xf32>
    %13 = vector.broadcast %12 : vector<1x128xf32> to vector<8x128xf32>
    %14 = arith.addf %11, %13 : vector<8x128xf32>
    %15 = arith.addf %0, %14 : vector<8x128xf32>
    %cst_11 = arith.constant 0.000000e+00 : f32
    %16 = vector.broadcast %cst_11 : f32 to vector<8x128xf32>
    %17 = arith.maximumf %15, %16 : vector<8x128xf32>
    %c0_12 = arith.constant 0 : index
    %c0_13 = arith.constant 0 : index
    %18 = vector.load %arg6[%c0_12, %c0_13] : memref<8x128xf32, #tpu.memory_space<vmem>>, vector<8x128xf32>
    tpu.vector_store %arg6[%c0_12, %c0_13], %17 {strides = array<i32>} : memref<8x128xf32, #tpu.memory_space<vmem>>, vector<8x128xf32>,
    return
  }
  func.func @transform_0(%arg0: i32) -> (i32, i32) {
    %c0_i32 = arith.constant 0 : i32
    %c0_i32_0 = arith.constant 0 : i32
    return %arg0, %c0_i32 : i32, i32
  }
  func.func @transform_1(%arg0: i32) -> (i32, i32) {
    %c0_i32 = arith.constant 0 : i32
    %c0_i32_0 = arith.constant 0 : i32
    %c0_i32_1 = arith.constant 0 : i32
    return %c0_i32, %c0_i32_0 : i32, i32
  }
  func.func @transform_2(%arg0: i32) -> (i32, i32) {
    %c0_i32 = arith.constant 0 : i32
    %c0_i32_0 = arith.constant 0 : i32
    %c0_i32_1 = arith.constant 0 : i32
    return %c0_i32, %c0_i32_0 : i32, i32
  }
  func.func @transform_3(%arg0: i32) -> (i32, i32) {
    %c0_i32 = arith.constant 0 : i32
    %c0_i32_0 = arith.constant 0 : i32
    %c0_i32_1 = arith.constant 0 : i32
    return %c0_i32, %c0_i32_0 : i32, i32
  }
  func.func @transform_4(%arg0: i32) -> (i32, i32) {
    %c0_i32 = arith.constant 0 : i32
    %c0_i32_0 = arith.constant 0 : i32
    %c0_i32_1 = arith.constant 0 : i32
    return %c0_i32, %c0_i32_0 : i32, i32
  }
  func.func @transform_5(%arg0: i32) -> (i32, i32) {
    %c0_i32 = arith.constant 0 : i32
    %c0_i32_0 = arith.constant 0 : i32
    return %arg0, %c0_i32 : i32, i32
  }
}

</mosaic_0001>

<bundles_post_ra>
// kernel: residual_block.1
= control target key start
LH: loop header
LB: loop body
LE: loop exit
PB: predicated region body
PF: predicated region fallthrough
CT: control target
= control target key end

     0   :  { %10 = vsyncpa [#allocation3], 0  ;;  %s417_s0 = inlined_call_operand.vmem [shape: f32[8,128], index: 0, kind: input, shape index: {}]   ;;  %s418_s1 = inlined_call_operand.hbm [shape: bf16[128,128], index: 1, kind: input, shape index: {}]   ;;  %s419_s2 = inlined_call_operand.vmem [shape: f32[1,128], index: 2, kind: input, shape index: {}]   ;;  %s420_s3 = inlined_call_operand.hbm [shape: bf16[128,128], index: 3, kind: input, shape index: {}]   ;;  %s421_s4 = inlined_call_operand.vmem [shape: f32[1,128], index: 4, kind: input, shape index: {}]   ;;  %s422_s5 = inlined_call_operand.vmem [shape: f32[8,128], index: 5, kind: output, shape index: {}]  }
   0x1   :  { %s18_s20 = sshll.u32 %s418_s1, 4  ;;  %s19_s20 = int_to_ptr.hbm [resolvable:$true] %s18_s20 }
   0x2   :  { %11 = vsyncpa [#allocation5], 0  ;;  %s365_s21 = smov [#allocation2]   ;;  %s33_s25 = sshll.u32 %s420_s3, 4  ;;  %s34_s25 = int_to_ptr.hbm [resolvable:$true] %s33_s25 }
   0x3   :  { %s20_s22 = sshll.u32 %s365_s21, 4  ;;  %s366_s26 = smov 64   ;;  %s21_s22 = int_to_ptr.vmem [resolvable:$true] %s20_s22 }
   0x4   :  { %s367_s27 = smov 4   ;;  %s368_s28 = smov [#allocation4]  }
   0x5   :  { %26 = dma.hbm_to_vmem [thread:$0]  %s19_s20, 1024, %s21_s22, [#allocation3], %s366_s26, %s366_s26, %s367_s27  }
   0x6   :  { %s35_s29 = sshll.u32 %s368_s28, 4  ;;  %s36_s29 = int_to_ptr.vmem [resolvable:$true] %s35_s29 }
   0x7   :  { %41 = dma.hbm_to_vmem [thread:$0]  %s34_s25, 1024, %s36_s29, [#allocation5], %s366_s26, %s366_s26, %s367_s27  }
   0x8   :  { %361 = dma.done.wait [#allocation3], 1024  }
   0x9   :  { %362 = vsyncadd [#allocation3], 4294966272 }
   0xa   :  { %363 = dma.done.wait [#allocation5], 1024  }
   0xb   :  { %364 = vsyncadd [#allocation5], 4294966272  ;;  %v298_v0 = vld [vmem:[#allocation2 + $0x38] sm:$0xff]  ;;  %v297_v1 = vld [vmem:[#allocation2 + $0x30] sm:$0xff] }
   0xc   :  { %122 = vmatpush.bf16.msra.mxu0 %v298_v0  ;;  %v306_v2 = vld [vmem:[#allocation4 + $0x38] sm:$0xff]  ;;  %v305_v3 = vld [vmem:[#allocation4 + $0x30] sm:$0xff]  ;;  %v296_v4 = vld [vmem:[#allocation2 + $0x28] sm:$0xff] }
   0xd   :  { %205 = vmatpush.bf16.msra.mxu1 %v306_v2  ;;  %v304_v5 = vld [vmem:[#allocation4 + $0x28] sm:$0xff]  ;;  %v295_v6 = vld [vmem:[#allocation2 + $0x20] sm:$0xff]  ;;  %v294_v8 = vld [vmem:[#allocation2 + $0x18] sm:$0xff] }
   0xe   :  { %v303_v7 = vld [vmem:[#allocation4 + $0x20] sm:$0xff]  ;;  %v302_v9 = vld [vmem:[#allocation4 + $0x18] sm:$0xff]  ;;  %v293_v10 = vld [vmem:[#allocation2 + $0x10] sm:$0xff] }
   0xf   :  { %v301_v11 = vld [vmem:[#allocation4 + $0x10] sm:$0xff]  ;;  %v292_v12 = vld [vmem:[#allocation2 + $0x8] sm:$0xff]  ;;  %v291_v13 = vld [vmem:[#allocation2] sm:$0xff] }
  0x10   :  { %123 = vmatpush.bf16.msra.mxu0 %v297_v1  ;;  %v52_v14 = vld [vmem:[%s417_s0] sm:$0xff]  ;;  %v300_v16 = vld [vmem:[#allocation4 + $0x8] sm:$0xff] }
  0x11   :  { %206 = vmatpush.bf16.msra.mxu1 %v305_v3  ;;  %v53_v15 = vpack.c.bf16 %v52_v14, %v52_v14  ;;  %v299_v17 = vld [vmem:[#allocation4] sm:$0xff] }
  0x12   :  { %v311_v18 = vld [vmem:[%s419_s2] ss:$0 sm:$0xff] }
  0x13   :  { %v312_v24 = vld [vmem:[%s421_s4] ss:$0 sm:$0xff] }
  0x14   :  { %124 = vmatpush.bf16.msra.mxu0 %v296_v4 }
  0x15   :  { %207 = vmatpush.bf16.msra.mxu1 %v304_v5 }
  0x18   :  { %125 = vmatpush.bf16.msra.mxu0 %v295_v6 }
  0x19   :  { %208 = vmatpush.bf16.msra.mxu1 %v303_v7 }
  0x1c   :  { %126 = vmatpush.bf16.msra.mxu0 %v294_v8 }
  0x1d   :  { %209 = vmatpush.bf16.msra.mxu1 %v302_v9 }
  0x20   :  { %127 = vmatpush.bf16.msra.mxu0 %v293_v10 }
  0x21   :  { %210 = vmatpush.bf16.msra.mxu1 %v301_v11 }
  0x24   :  { %128 = vmatpush.bf16.msra.mxu0 %v292_v12 }
  0x25   :  { %211 = vmatpush.bf16.msra.mxu1 %v300_v16 }
  0x28   :  { %129 = vmatpush.bf16.msra.mxu0 %v291_v13 }
  0x29   :  { %212 = vmatpush.bf16.msra.mxu1 %v299_v17 }
  0x2b   :  { %130 = vmatmul.bf16.vlgmr.msra.gmra.mxu0 %v53_v15 }
  0xa8   :  { %v131_v19 = vpop.f32.mrf.mxu0 }
  0xa9   :  { %v132_v20 = vadd.f32 %v311_v18, %v131_v19 }
  0xab   :  { %v135_v21 = vmax.f32 %v132_v20, 0.0 }
  0xad   :  { %v136_v22 = vpack.c.bf16 %v135_v21, %v135_v21 }
  0xaf   :  { %213 = vmatmul.bf16.vlgmr.msra.gmra.mxu1 %v136_v22 }
  0xb0   :  { %v133_v23 = vpop.f32.mrf.mxu0 }
 0x12c   :  { %v214_v25 = vpop.f32.mrf.mxu1 }
 0x12d   :  { %v215_v26 = vadd.f32 %v312_v24, %v214_v25 }
 0x12f   :  { %v218_v27 = vadd.f32 %v215_v26, %v52_v14 }
 0x131   :  { %v219_v28 = vmax.f32 %v218_v27, 0.0 }
 0x133   :  { %220 = vst [vmem:[%s422_s5] sm:$0xff] %v219_v28 }
 0x134   :  { %v216_v29 = vpop.f32.mrf.mxu1 }
 0x135   :  { %225 = vsyncpa [#allocation3], 1 }
 0x136   :  { %226 = vsyncpa [#allocation5], 1 }

</bundles_post_ra>
